<compile_context>
chip_gen: v5e
topology: v5e:2x2
jax: 0.10.0
libtpu: 0.0.40
codegen_flags: <defaults>
</compile_context>

<pallas_src>
import numpy as np
import jax
import jax.numpy as jnp
from jax.experimental import pallas as pl
from jax.experimental.pallas import tpu as pltpu


# ----------------------------------------------------------------------------
# Bilinear-resize matrices (PyTorch align_corners=False semantics)
# ----------------------------------------------------------------------------
def bilinear_matrix(out_size, in_size):
    """Row-stochastic (out_size, in_size) matrix reproducing F.interpolate
    (mode='bilinear', align_corners=False) along one axis."""
    if out_size == in_size:
        return np.eye(out_size, dtype=np.float32)
    o = np.arange(out_size, dtype=np.float64)
    scale = in_size / out_size
    src = (o + 0.5) * scale - 0.5
    src = np.maximum(src, 0.0)
    i0 = np.minimum(np.floor(src).astype(np.int64), in_size - 1)
    i1 = np.minimum(i0 + 1, in_size - 1)
    l1 = src - i0
    l0 = 1.0 - l1
    A = np.zeros((out_size, in_size), dtype=np.float64)
    np.add.at(A, (np.arange(out_size), i0), l0)
    np.add.at(A, (np.arange(out_size), i1), l1)
    return A.astype(np.float32)


def kron_resize_T(src_hw, dst_hw):
    """(Hi*Wi, Ho*Wo) matrix M s.t.  X(C, Hi*Wi) @ M == bilinear_resize(X)."""
    Hi, Wi = src_hw
    Ho, Wo = dst_hw
    ah = bilinear_matrix(Ho, Hi)                     # (Ho, Hi)
    aw = bilinear_matrix(Wo, Wi)                     # (Wo, Wi)
    K = np.kron(ah.astype(np.float64), aw.astype(np.float64))   # (Ho*Wo, Hi*Wi)
    return np.ascontiguousarray(K.T).astype(np.float32)         # (Hi*Wi, Ho*Wo)


# ----------------------------------------------------------------------------
# Fused PAN kernel
# ----------------------------------------------------------------------------
def _make_pan_kernel(L):
    """Build the fused kernel for L pyramid levels.

    Ref order: [x_aug_0..L-1, w_aug_0..L-1, up_0..L-2, dn_0..L-2, out_0..L-1]
      x_aug_i : (1, Cin_i+1, HW_i)   input block (bias ones-row appended)
      w_aug_i : (Cout, Cin_i+1)      weight with bias column appended
      up_j    : (HW_{j+1}, HW_j)     kron resize matrix, level j+1 -> j
      dn_j    : (HW_j, HW_{j+1})     kron resize matrix, level j   -> j+1
      out_i   : (1, Cout, HW_i)
    """

    def kernel(*refs):
        x_refs = refs[0:L]
        w_refs = refs[L:2 * L]
        up_refs = refs[2 * L:3 * L - 1]
        dn_refs = refs[3 * L - 1:4 * L - 2]
        o_refs = refs[4 * L - 2:]

        # Lateral 1x1 convs (bias folded into the matmul).
        lat = [
            jnp.dot(w_refs[i][...], x_refs[i][0],
                    preferred_element_type=jnp.float32)          # (Cout, HW_i)
            for i in range(L)
        ]

        # Top-down path: laterals[i-1] += upsample(laterals[i])
        for i in range(L - 1, 0, -1):
            lat[i - 1] = lat[i - 1] + jnp.dot(
                lat[i], up_refs[i - 1][...],
                preferred_element_type=jnp.float32)              # (Cout, HW_{i-1})

        inter = list(lat)

        # Bottom-up path: inter[i+1] += downsample(inter[i])
        for i in range(L - 1):
            inter[i + 1] = inter[i + 1] + jnp.dot(
                inter[i], dn_refs[i][...],
                preferred_element_type=jnp.float32)              # (Cout, HW_{i+1})

        for i in range(L):
            o_refs[i][0] = inter[i]

    return kernel


def pan_forward(inputs, params):
    """PAN.forward: laterals -> top-down fuse -> bottom-up fuse (one kernel)."""
    assert len(inputs) == len(params)
    L = len(inputs)
    N = inputs[0].shape[0]
    Cout = params[0][0].shape[0]
    shapes = [(int(x.shape[2]), int(x.shape[3])) for x in inputs]
    HWs = [h * w for (h, w) in shapes]

    # Fold bias into the matmul: append ones row to X and bias column to W.
    xs, ws = [], []
    for x, (w, b) in zip(inputs, params):
        n, cin, h, wd = x.shape
        x2 = x.reshape(n, cin, h * wd).astype(jnp.float32)
        ones = jnp.ones((n, 1, h * wd), jnp.float32)
        xs.append(jnp.concatenate([x2, ones], axis=1))                    # (N, Cin+1, HW)
        ws.append(jnp.concatenate([w, b[:, None]], axis=1).astype(jnp.float32))  # (Cout, Cin+1)

    # Precomputed kron bilinear-resize matrices.
    ups = [jnp.asarray(kron_resize_T(shapes[i], shapes[i - 1])) for i in range(1, L)]
    dns = [jnp.asarray(kron_resize_T(shapes[i], shapes[i + 1])) for i in range(L - 1)]

    in_specs = []
    for x in xs:
        c, hw = int(x.shape[1]), int(x.shape[2])
        in_specs.append(pl.BlockSpec((1, c, hw), lambda n: (n, 0, 0)))
    for w in ws:
        in_specs.append(pl.BlockSpec(tuple(int(s) for s in w.shape), lambda n: (0, 0)))
    for m in ups + dns:
        in_specs.append(pl.BlockSpec(tuple(int(s) for s in m.shape), lambda n: (0, 0)))

    out_shape = tuple(jax.ShapeDtypeStruct((N, Cout, hw), jnp.float32) for hw in HWs)
    out_specs = tuple(pl.BlockSpec((1, Cout, hw), lambda n: (n, 0, 0)) for hw in HWs)

    # Advisory cost estimate.
    flops = 0
    for x, hw in zip(xs, HWs):
        flops += 2 * N * Cout * int(x.shape[1]) * hw
    for i in range(1, L):
        flops += 2 * N * Cout * HWs[i] * HWs[i - 1]
    for i in range(L - 1):
        flops += 2 * N * Cout * HWs[i] * HWs[i + 1]
    bytes_accessed = sum(int(np.prod(a.shape)) * 4 for a in (*xs, *ws, *ups, *dns))
    bytes_accessed += sum(N * Cout * hw * 4 for hw in HWs)

    outs = pl.pallas_call(
        _make_pan_kernel(L),
        out_shape=out_shape,
        grid=(N,),
        in_specs=in_specs,
        out_specs=out_specs,
        compiler_params=pltpu.CompilerParams(dimension_semantics=("parallel",)),
        cost_estimate=pl.CostEstimate(flops=int(flops), transcendentals=0,
                                      bytes_accessed=int(bytes_accessed)),
    )(*xs, *ws, *ups, *dns)

    return tuple(o.reshape(N, Cout, h, w) for o, (h, w) in zip(outs, shapes))


# ----------------------------------------------------------------------------
# Pure-JAX reference (same math, no Pallas) for sanity checking.
# ----------------------------------------------------------------------------
def _ref_conv1x1(x, w, b):
    return jnp.einsum('oc,nchw->nohw', w, x) + b[None, :, None, None]


def _ref_resize_add(src, dst):
    _, _, Hi, Wi = src.shape
    _, _, Ho, Wo = dst.shape
    ah = jnp.asarray(bilinear_matrix(Ho, Hi))
    aw = jnp.asarray(bilinear_matrix(Wo, Wi))
    return dst + jnp.einsum('oh,pw,nchw->ncop', ah, aw, src)


def _ref_pan_forward(inputs, params):
    laterals = [_ref_conv1x1(x, w, b) for x, (w, b) in zip(inputs, params)]
    L = len(laterals)
    for i in range(L - 1, 0, -1):
        laterals[i - 1] = _ref_resize_add(laterals[i], laterals[i - 1])
    inter = list(laterals)
    for i in range(L - 1):
        inter[i + 1] = _ref_resize_add(inter[i], inter[i + 1])
    return tuple(inter)


# ----------------------------------------------------------------------------
# Main
# ----------------------------------------------------------------------------
if __name__ == "__main__":
    key = jax.random.PRNGKey(0)

    # PAN config (small, synthetic): 3 pyramid levels.
    in_channels = [8, 16, 32]
    out_channels = 16
    batch = 2
    spatial = [16, 8, 4]

    # Deterministic xavier-uniform weights + zero bias (ConvModule: 1x1 conv,
    # bias=True, no norm, no activation).
    params = []
    for cin in in_channels:
        key, kw = jax.random.split(key)
        bound = float(np.sqrt(6.0 / (cin + out_channels)))
        w = jax.random.uniform(kw, (out_channels, cin), jnp.float32, -bound, bound)
        b = jnp.zeros((out_channels,), jnp.float32)
        params.append((w, b))

    # Inputs (NCHW, like PyTorch).
    inputs = []
    for cin, s in zip(in_channels, spatial):
        key, kx = jax.random.split(key)
        inputs.append(jax.random.normal(kx, (batch, cin, s, s), jnp.float32))

    outs = pan_forward(inputs, params)
    outs = jax.block_until_ready(outs)

    refs = _ref_pan_forward(inputs, params)
    for o, r in zip(outs, refs):
        np.testing.assert_allclose(np.asarray(o), np.asarray(r), rtol=1e-4, atol=1e-4)

    print("KERNEL_OK")
</pallas_src>

<mosaic_0001>
module attributes {stable_mosaic.version = 11 : i64} {
  func.func @kernel(%arg0: i32, %arg1: memref<1x9x256xf32, #tpu.memory_space<vmem>>, %arg2: memref<1x17x64xf32, #tpu.memory_space<vmem>>, %arg3: memref<1x33x16xf32, #tpu.memory_space<vmem>>, %arg4: memref<16x9xf32, #tpu.memory_space<vmem>>, %arg5: memref<16x17xf32, #tpu.memory_space<vmem>>, %arg6: memref<16x33xf32, #tpu.memory_space<vmem>>, %arg7: memref<64x256xf32, #tpu.memory_space<vmem>>, %arg8: memref<16x64xf32, #tpu.memory_space<vmem>>, %arg9: memref<256x64xf32, #tpu.memory_space<vmem>>, %arg10: memref<64x16xf32, #tpu.memory_space<vmem>>, %arg11: memref<1x16x256xf32, #tpu.memory_space<vmem>>, %arg12: memref<1x16x64xf32, #tpu.memory_space<vmem>>, %arg13: memref<1x16x16xf32, #tpu.memory_space<vmem>>) attributes {dimension_semantics = [#tpu.dimension_semantics<parallel>], iteration_bounds = array<i64: 2>, scalar_prefetch = 0 : i64, scratch_operands = 0 : i64, tpu.core_type = #tpu.core_type<tc>, window_params = [{transform_indices = @transform_0, window_bounds = array<i64: 1, 9, 256>}, {transform_indices = @transform_1, window_bounds = array<i64: 1, 17, 64>}, {transform_indices = @transform_2, window_bounds = array<i64: 1, 33, 16>}, {pipeline_mode = #tpu.pipeline_mode<synchronous>, transform_indices = @transform_3, window_bounds = array<i64: 16, 9>}, {pipeline_mode = #tpu.pipeline_mode<synchronous>, transform_indices = @transform_4, window_bounds = array<i64: 16, 17>}, {pipeline_mode = #tpu.pipeline_mode<synchronous>, transform_indices = @transform_5, window_bounds = array<i64: 16, 33>}, {pipeline_mode = #tpu.pipeline_mode<synchronous>, transform_indices = @transform_6, window_bounds = array<i64: 64, 256>}, {pipeline_mode = #tpu.pipeline_mode<synchronous>, transform_indices = @transform_7, window_bounds = array<i64: 16, 64>}, {pipeline_mode = #tpu.pipeline_mode<synchronous>, transform_indices = @transform_8, window_bounds = array<i64: 256, 64>}, {pipeline_mode = #tpu.pipeline_mode<synchronous>, transform_indices = @transform_9, window_bounds = array<i64: 64, 16>}, {transform_indices = @transform_10, window_bounds = array<i64: 1, 16, 256>}, {transform_indices = @transform_11, window_bounds = array<i64: 1, 16, 64>}, {transform_indices = @transform_12, window_bounds = array<i64: 1, 16, 16>}]} {
    %c0 = arith.constant 0 : index
    %c0_0 = arith.constant 0 : index
    %0 = vector.load %arg4[%c0, %c0_0] : memref<16x9xf32, #tpu.memory_space<vmem>>, vector<16x9xf32>
    %c0_1 = arith.constant 0 : index
    %c0_2 = arith.constant 0 : index
    %c0_3 = arith.constant 0 : index
    %1 = vector.load %arg1[%c0_1, %c0_2, %c0_3] : memref<1x9x256xf32, #tpu.memory_space<vmem>>, vector<1x9x256xf32>
    %2 = vector.shape_cast %1 : vector<1x9x256xf32> to vector<9x256xf32>
    %cst = arith.constant dense<0.000000e+00> : vector<16x256xf32>
    %3 = tpu.matmul %0, %2, %cst {dimension_numbers = #tpu.dot_dimension_numbers<[1], [0], [0], [1], [0, 0, 1, 1], [], []>} : vector<16x9xf32>, vector<9x256xf32>, vector<16x256xf32> -> vector<16x256xf32>
    %c0_4 = arith.constant 0 : index
    %c0_5 = arith.constant 0 : index
    %4 = vector.load %arg5[%c0_4, %c0_5] : memref<16x17xf32, #tpu.memory_space<vmem>>, vector<16x17xf32>
    %c0_6 = arith.constant 0 : index
    %c0_7 = arith.constant 0 : index
    %c0_8 = arith.constant 0 : index
    %5 = vector.load %arg2[%c0_6, %c0_7, %c0_8] : memref<1x17x64xf32, #tpu.memory_space<vmem>>, vector<1x17x64xf32>
    %6 = vector.shape_cast %5 : vector<1x17x64xf32> to vector<17x64xf32>
    %cst_9 = arith.constant dense<0.000000e+00> : vector<16x64xf32>
    %7 = tpu.matmul %4, %6, %cst_9 {dimension_numbers = #tpu.dot_dimension_numbers<[1], [0], [0], [1], [0, 0, 1, 1], [], []>} : vector<16x17xf32>, vector<17x64xf32>, vector<16x64xf32> -> vector<16x64xf32>
    %c0_10 = arith.constant 0 : index
    %c0_11 = arith.constant 0 : index
    %8 = vector.load %arg6[%c0_10, %c0_11] : memref<16x33xf32, #tpu.memory_space<vmem>>, vector<16x33xf32>
    %c0_12 = arith.constant 0 : index
    %c0_13 = arith.constant 0 : index
    %c0_14 = arith.constant 0 : index
    %9 = vector.load %arg3[%c0_12, %c0_13, %c0_14] : memref<1x33x16xf32, #tpu.memory_space<vmem>>, vector<1x33x16xf32>
    %10 = vector.shape_cast %9 : vector<1x33x16xf32> to vector<33x16xf32>
    %cst_15 = arith.constant dense<0.000000e+00> : vector<16x16xf32>
    %11 = tpu.matmul %8, %10, %cst_15 {dimension_numbers = #tpu.dot_dimension_numbers<[1], [0], [0], [1], [0, 0, 1, 1], [], []>} : vector<16x33xf32>, vector<33x16xf32>, vector<16x16xf32> -> vector<16x16xf32>
    %c0_16 = arith.constant 0 : index
    %c0_17 = arith.constant 0 : index
    %12 = vector.load %arg8[%c0_16, %c0_17] : memref<16x64xf32, #tpu.memory_space<vmem>>, vector<16x64xf32>
    %cst_18 = arith.constant dense<0.000000e+00> : vector<16x64xf32>
    %13 = tpu.matmul %11, %12, %cst_18 {dimension_numbers = #tpu.dot_dimension_numbers<[1], [0], [0], [1], [0, 0, 1, 1], [], []>} : vector<16x16xf32>, vector<16x64xf32>, vector<16x64xf32> -> vector<16x64xf32>
    %14 = arith.addf %7, %13 : vector<16x64xf32>
    %c0_19 = arith.constant 0 : index
    %c0_20 = arith.constant 0 : index
    %15 = vector.load %arg7[%c0_19, %c0_20] : memref<64x256xf32, #tpu.memory_space<vmem>>, vector<64x256xf32>
    %cst_21 = arith.constant dense<0.000000e+00> : vector<16x256xf32>
    %16 = tpu.matmul %14, %15, %cst_21 {dimension_numbers = #tpu.dot_dimension_numbers<[1], [0], [0], [1], [0, 0, 1, 1], [], []>} : vector<16x64xf32>, vector<64x256xf32>, vector<16x256xf32> -> vector<16x256xf32>
    %17 = arith.addf %3, %16 : vector<16x256xf32>
    %c0_22 = arith.constant 0 : index
    %c0_23 = arith.constant 0 : index
    %18 = vector.load %arg9[%c0_22, %c0_23] : memref<256x64xf32, #tpu.memory_space<vmem>>, vector<256x64xf32>
    %cst_24 = arith.constant dense<0.000000e+00> : vector<16x64xf32>
    %19 = tpu.matmul %17, %18, %cst_24 {dimension_numbers = #tpu.dot_dimension_numbers<[1], [0], [0], [1], [0, 0, 1, 1], [], []>} : vector<16x256xf32>, vector<256x64xf32>, vector<16x64xf32> -> vector<16x64xf32>
    %20 = arith.addf %14, %19 : vector<16x64xf32>
    %c0_25 = arith.constant 0 : index
    %c0_26 = arith.constant 0 : index
    %21 = vector.load %arg10[%c0_25, %c0_26] : memref<64x16xf32, #tpu.memory_space<vmem>>, vector<64x16xf32>
    %cst_27 = arith.constant dense<0.000000e+00> : vector<16x16xf32>
    %22 = tpu.matmul %20, %21, %cst_27 {dimension_numbers = #tpu.dot_dimension_numbers<[1], [0], [0], [1], [0, 0, 1, 1], [], []>} : vector<16x64xf32>, vector<64x16xf32>, vector<16x16xf32> -> vector<16x16xf32>
    %23 = arith.addf %11, %22 : vector<16x16xf32>
    %c0_28 = arith.constant 0 : index
    %c0_29 = arith.constant 0 : index
    %c0_30 = arith.constant 0 : index
    %24 = vector.load %arg11[%c0_28, %c0_29, %c0_30] : memref<1x16x256xf32, #tpu.memory_space<vmem>>, vector<1x16x256xf32>
    %25 = vector.shape_cast %24 : vector<1x16x256xf32> to vector<16x256xf32>
    %26 = vector.shape_cast %17 : vector<16x256xf32> to vector<1x16x256xf32>
    tpu.vector_store %arg11[%c0_28, %c0_29, %c0_30], %26 {strides = array<i32>} : memref<1x16x256xf32, #tpu.memory_space<vmem>>, vector<1x16x256xf32>,
    %c0_31 = arith.constant 0 : index
    %c0_32 = arith.constant 0 : index
    %c0_33 = arith.constant 0 : index
    %27 = vector.load %arg12[%c0_31, %c0_32, %c0_33] : memref<1x16x64xf32, #tpu.memory_space<vmem>>, vector<1x16x64xf32>
    %28 = vector.shape_cast %27 : vector<1x16x64xf32> to vector<16x64xf32>
    %29 = vector.shape_cast %20 : vector<16x64xf32> to vector<1x16x64xf32>
    tpu.vector_store %arg12[%c0_31, %c0_32, %c0_33], %29 {strides = array<i32>} : memref<1x16x64xf32, #tpu.memory_space<vmem>>, vector<1x16x64xf32>,
    %c0_34 = arith.constant 0 : index
    %c0_35 = arith.constant 0 : index
    %c0_36 = arith.constant 0 : index
    %30 = vector.load %arg13[%c0_34, %c0_35, %c0_36] : memref<1x16x16xf32, #tpu.memory_space<vmem>>, vector<1x16x16xf32>
    %31 = vector.shape_cast %30 : vector<1x16x16xf32> to vector<16x16xf32>
    %32 = vector.shape_cast %23 : vector<16x16xf32> to vector<1x16x16xf32>
    tpu.vector_store %arg13[%c0_34, %c0_35, %c0_36], %32 {strides = array<i32>} : memref<1x16x16xf32, #tpu.memory_space<vmem>>, vector<1x16x16xf32>,
    return
  }
  func.func @transform_0(%arg0: i32) -> (i32, i32, i32) {
    %c0_i32 = arith.constant 0 : i32
    %c0_i32_0 = arith.constant 0 : i32
    %c0_i32_1 = arith.constant 0 : i32
    return %arg0, %c0_i32, %c0_i32_0 : i32, i32, i32
  }
  func.func @transform_1(%arg0: i32) -> (i32, i32, i32) {
    %c0_i32 = arith.constant 0 : i32
    %c0_i32_0 = arith.constant 0 : i32
    %c0_i32_1 = arith.constant 0 : i32
    return %arg0, %c0_i32, %c0_i32_0 : i32, i32, i32
  }
  func.func @transform_2(%arg0: i32) -> (i32, i32, i32) {
    %c0_i32 = arith.constant 0 : i32
    %c0_i32_0 = arith.constant 0 : i32
    %c0_i32_1 = arith.constant 0 : i32
    return %arg0, %c0_i32, %c0_i32_0 : i32, i32, i32
  }
  func.func @transform_3(%arg0: i32) -> (i32, i32) {
    %c0_i32 = arith.constant 0 : i32
    %c0_i32_0 = arith.constant 0 : i32
    %c0_i32_1 = arith.constant 0 : i32
    return %c0_i32, %c0_i32_0 : i32, i32
  }
  func.func @transform_4(%arg0: i32) -> (i32, i32) {
    %c0_i32 = arith.constant 0 : i32
    %c0_i32_0 = arith.constant 0 : i32
    %c0_i32_1 = arith.constant 0 : i32
    return %c0_i32, %c0_i32_0 : i32, i32
  }
  func.func @transform_5(%arg0: i32) -> (i32, i32) {
    %c0_i32 = arith.constant 0 : i32
    %c0_i32_0 = arith.constant 0 : i32
    %c0_i32_1 = arith.constant 0 : i32
    return %c0_i32, %c0_i32_0 : i32, i32
  }
  func.func @transform_6(%arg0: i32) -> (i32, i32) {
    %c0_i32 = arith.constant 0 : i32
    %c0_i32_0 = arith.constant 0 : i32
    %c0_i32_1 = arith.constant 0 : i32
    return %c0_i32, %c0_i32_0 : i32, i32
  }
  func.func @transform_7(%arg0: i32) -> (i32, i32) {
    %c0_i32 = arith.constant 0 : i32
    %c0_i32_0 = arith.constant 0 : i32
    %c0_i32_1 = arith.constant 0 : i32
    return %c0_i32, %c0_i32_0 : i32, i32
  }
  func.func @transform_8(%arg0: i32) -> (i32, i32) {
    %c0_i32 = arith.constant 0 : i32
    %c0_i32_0 = arith.constant 0 : i32
    %c0_i32_1 = arith.constant 0 : i32
    return %c0_i32, %c0_i32_0 : i32, i32
  }
  func.func @transform_9(%arg0: i32) -> (i32, i32) {
    %c0_i32 = arith.constant 0 : i32
    %c0_i32_0 = arith.constant 0 : i32
    %c0_i32_1 = arith.constant 0 : i32
    return %c0_i32, %c0_i32_0 : i32, i32
  }
  func.func @transform_10(%arg0: i32) -> (i32, i32, i32) {
    %c0_i32 = arith.constant 0 : i32
    %c0_i32_0 = arith.constant 0 : i32
    %c0_i32_1 = arith.constant 0 : i32
    return %arg0, %c0_i32, %c0_i32_0 : i32, i32, i32
  }
  func.func @transform_11(%arg0: i32) -> (i32, i32, i32) {
    %c0_i32 = arith.constant 0 : i32
    %c0_i32_0 = arith.constant 0 : i32
    %c0_i32_1 = arith.constant 0 : i32
    return %arg0, %c0_i32, %c0_i32_0 : i32, i32, i32
  }
  func.func @transform_12(%arg0: i32) -> (i32, i32, i32) {
    %c0_i32 = arith.constant 0 : i32
    %c0_i32_0 = arith.constant 0 : i32
    %c0_i32_1 = arith.constant 0 : i32
    return %arg0, %c0_i32, %c0_i32_0 : i32, i32, i32
  }
}

</mosaic_0001>

<bundles_post_ra>
// kernel: tpu_custom_call.1
= control target key start
LH: loop header
LB: loop body
LE: loop exit
PB: predicated region body
PF: predicated region fallthrough
CT: control target
= control target key end

     0   :  { %s1739_s0 = inlined_call_operand.vmem [shape: f32[2,9,256], index: 0, kind: input, shape index: {}]   ;;  %s1740_s1 = inlined_call_operand.vmem [shape: f32[2,17,64], index: 1, kind: input, shape index: {}]   ;;  %s1741_s2 = inlined_call_operand.vmem [shape: f32[2,33,16], index: 2, kind: input, shape index: {}]   ;;  %s1742_s3 = inlined_call_operand.vmem [shape: f32[16,9], index: 3, kind: input, shape index: {}]   ;;  %s1743_s4 = inlined_call_operand.vmem [shape: f32[16,17], index: 4, kind: input, shape index: {}]   ;;  %s1744_s5 = inlined_call_operand.vmem [shape: f32[16,33], index: 5, kind: input, shape index: {}]   ;;  %s1745_s6 = inlined_call_operand.vmem [shape: f32[64,256], index: 6, kind: input, shape index: {}]   ;;  %s1746_s7 = inlined_call_operand.vmem [shape: f32[16,64], index: 7, kind: input, shape index: {}]   ;;  %s1747_s8 = inlined_call_operand.vmem [shape: f32[256,64], index: 8, kind: input, shape index: {}]   ;;  %s1748_s9 = inlined_call_operand.vmem [shape: f32[64,16], index: 9, kind: input, shape index: {}]   ;;  %s1749_s10 = inlined_call_operand.hbm [shape: f32[2,16,256], index: 10, kind: output, shape index: {0}]   ;;  %s1750_s11 = inlined_call_operand.hbm [shape: f32[2,16,64], index: 11, kind: output, shape index: {1}]   ;;  %s1751_s12 = inlined_call_operand.hbm [shape: f32[2,16,16], index: 12, kind: output, shape index: {2}]  }
   0x1   :  { %1756 = sst [smem:[#allocation11_spill]] %s1739_s0 }
   0x2   :  { %1757 = sst [smem:[#allocation12_spill]] %s1740_s1 }
   0x3   :  { %1758 = sst [smem:[#allocation13_spill]] %s1741_s2 }
   0x4   :  { %1759 = sst [smem:[#allocation14_spill]] %s1742_s3 }
   0x5   :  { %1760 = sst [smem:[#allocation15_spill]] %s1743_s4 }
   0x6   :  { %1761 = sst [smem:[#allocation16_spill]] %s1744_s5 }
   0x7   :  { %1762 = sst [smem:[#allocation17_spill]] %s1745_s6 }
   0x8   :  { %18 = vsyncpa [#allocation3], 0 }
   0x9   :  { %20 = vsyncpa [#allocation3 + $0x1], 0 }
   0xa   :  { %21 = vsyncpa [#allocation5], 0 }
   0xb   :  { %23 = vsyncpa [#allocation5 + $0x1], 0  ;;  %s1345_s21 = smov 0   ;;  %s1347_s22 = smov 0  }
   0xc   :  { %s1349_s23 = smov 0   ;;  %s1351_s24 = smov 0  }
   0xd LB: > { %1763 = sst [smem:[#allocation9_spill]] %s1270_s23  ;;  %s1366_s25 = sadd.s32 4294967295, %s1274_s24   ;;  %s1274_s24 = sphi %s1351_s24, %s1781_s24   ;;  %s1270_s23 = sphi %s1349_s23, %s1778_s23   ;;  %s1266_s22 = sphi %s1347_s22, %s1780_s22   ;;  %s1262_s21 = sphi %s1345_s21, %s1779_s21  }
   0xe   : > { %s1752_s26 = sadd.s32 4294967294, %s1274_s24   ;;  %s1370_s27 = sadd.s32 1, %s1274_s24  }
   0xf   : > { %s261_s28 = sadd.s32 1, %s1270_s23  ;;  %s258_s29 = ssub.s32 %s1274_s24, %s1370_s27 }
  0x10   : > { %p271_p0 = scmp.ne.s32.totalorder %s1270_s23, %s1266_s22  ;;  %p259_p1 = scmp.eq.s32.totalorder %s258_s29, 0 }
  0x11   : > { %p272_p2 = scmp.eq.s32.totalorder %s1366_s25, 1  ;;  %p277_p3 = scmp.ne.s32.totalorder %s1266_s22, %s1262_s21 }
  0x12   : > { %p278_p4 = scmp.eq.s32.totalorder %s1752_s26, 1  ;;  %p1054_p7 = scmp.ge.s32.totalorder %s1274_s24, 1 }
  0x13   : > { %s1383_s30 = scalar_select %p259_p1, %s1270_s23, %s261_s28  }
  0x14   : > { %p1385_p5 = por %p272_p2, %p271_p0  ;;  %p1389_p6 = por %p278_p4, %p277_p3 }
  0x15   : > { %1764 = sst [smem:[#allocation10_spill]] %s1383_s30  ;;  %p393_p8 = scmp.lt.s32.totalorder %s1274_s24, 3 }
  0x17   : > { %p394_p9 = pnand %p1054_p7, %p393_p8 }
  0x18   : > { %p455_p10 = scmp.lt.s32.totalorder (!%p394_p9), %s1366_s25, 1  ;;  %s1767_s2 = sld [smem:[#allocation13_spill]] (!%p394_p9) }
  0x19   : > { %397 = sbr.rel (%p394_p9) target bundleno = 718 (0x2ce), region = 60  ;;  %s1768_s1 = sld [smem:[#allocation12_spill]] (!%p394_p9) }
  0x1a   : > { %s1769_s4 = sld [smem:[#allocation15_spill]] (!%p394_p9)  ;;  %s847_s26 = sand.u32 (!%p394_p9), 1, %s1366_s25  }
  0x1b   : > { %s1770_s5 = sld [smem:[#allocation16_spill]] (!%p394_p9) }
  0x1c   : > { %s1771_s0 = sld [smem:[#allocation11_spill]] (!%p394_p9) }
  0x1d   : > { %s1772_s6 = sld [smem:[#allocation17_spill]] (!%p394_p9) }
  0x1e   : > { %v523_v0 = vld [vmem:[%s1746_s7 + $0x8] sm:$0xff]  ;;  %s1400_s17 = scalar_select %p455_p10, %s1366_s25, 1  ;;  %vm495_vm0 = vcmask 1040384   ;;  %vm554_vm1 = vcmask 138240   ;;  %vm488_vm2 = vcmask 269312   ;;  %v522_v12 = vld [vmem:[%s1746_s7] sm:$0xff] }
  0x1f   : > { %545 = vmatpush.msra.mxu1 %v523_v0  ;;  %vm524_vm3 = vcmask 130048   ;;  %s1773_s3 = sld [smem:[#allocation14_spill]]  ;;  %vm656_vm4 = vcmask 72704   ;;  %v730_v38 = vld [vmem:[%s1747_s8 + $0x78] sm:$0xff]  ;;  %v729_v39 = vld [vmem:[%s1747_s8 + $0x70] sm:$0xff]  ;;  %v728_v41 = vld [vmem:[%s1747_s8 + $0x68] sm:$0xff] }
  0x20   : > { %s1098_s18 = smul.u32 40, %s1400_s17  ;;  %v476_v8 = vld [vmem:[%s1769_s4] sm:$0xff]  ;;  %v477_v13 = vld [vmem:[%s1769_s4 + $0x8] sm:$0xff]  ;;  %s1093_s15 = sshll.u32 %s1400_s17, 5  ;;  %v746_v42 = vld [vmem:[%s1747_s8 + $0xf8] sm:$0xff]  ;;  %vm603_vm5 = vcmask 523264  }
  0x21   : > { %s1097_s19 = smul.u32 24, %s1400_s17  ;;  %v481_v10 = vld [vmem:[%s1770_s5] sm:$0xff]  ;;  %v482_v11 = vld [vmem:[%s1770_s5 + $0x8] sm:$0xff]  ;;  %546 = vmatpush.msra.mxu1 %v522_v12  ;;  %v745_v43 = vld [vmem:[%s1747_s8 + $0xf0] sm:$0xff] }
  0x22   : > { %s469_s29 = scalar_lea.vmem %s1767_s2, %s1098_s18  ;;  %s1431_s30 = scalar_lea.vmem %s1771_s0, %s1093_s15  ;;  %v727_v44 = vld [vmem:[%s1747_s8 + $0x60] sm:$0xff]  ;;  %v744_v45 = vld [vmem:[%s1747_s8 + $0xe8] sm:$0xff]  ;;  %v726_v48 = vld [vmem:[%s1747_s8 + $0x58] sm:$0xff] }
  0x23   : > { %v487_v1 = vld [vmem:[%s469_s29 + $0x20] sm:$0x1]  ;;  %v486_v2 = vld [vmem:[%s469_s29 + $0x18] sm:$0xff]  ;;  %s464_s23 = scalar_lea.vmem %s1768_s1, %s1097_s19  ;;  %v485_v4 = vld [vmem:[%s469_s29 + $0x10] sm:$0xff]  ;;  %770 = vmatpush.msrb.mxu1 %v746_v42  ;;  %s1626_s19 = sand.u32 1, %s1266_s22  }
  0x24   : > { %1062 = vmatpush.msk.msra.mxu0 %vm495_vm0, %v487_v1  ;;  %v480_v3 = vld [vmem:[%s464_s23 + $0x10] sm:$0x1]  ;;  %v479_v5 = vld [vmem:[%s464_s23 + $0x8] sm:$0xff]  ;;  %v478_v6 = vld [vmem:[%s464_s23] sm:$0xff]  ;;  %s1055_s20 = sshll.u32 %s1626_s19, 5  ;;  %s1754_s18 = sshll.u32 %s1626_s19, 4 }
  0x25   : > { %1067 = vmatpush.msk.msra.mxu2 %vm495_vm0, %v480_v3  ;;  %v484_v7 = vld [vmem:[%s469_s29 + $0x8] sm:$0xff]  ;;  %v483_v9 = vld [vmem:[%s469_s29] sm:$0xff]  ;;  %v602_v14 = vld [vmem:[%s1772_s6 + $0x78] sm:$0xff]  ;;  %771 = vmatpush.msrb.mxu1 %v745_v43  ;;  %s1629_s28 = scalar_lea.vmem [#allocation2], %s1055_s20  ;;  %s447_s20 = scalar_lea.vmem [#allocation4], %s1754_s18 }
  0x26   : > { %511 = vmatpush.msra.mxu0 %v486_v2  ;;  %v601_v15 = vld [vmem:[%s1772_s6 + $0x70] sm:$0xff]  ;;  %v600_v16 = vld [vmem:[%s1772_s6 + $0x68] sm:$0xff]  ;;  %v599_v17 = vld [vmem:[%s1772_s6 + $0x60] sm:$0xff]  ;;  %s882_s17 = sshll.u32 %s447_s20, 4  ;;  %s1755_s29 = sshll.u32 %s1366_s25, 4  ;;  %s883_s17 = int_to_ptr.vmem [resolvable:$true] %s882_s17 }
  0x27   : > { %578 = vmatpush.msra.mxu2 %v479_v5  ;;  %618 = vmatpush.msra.mxu3 %v601_v15  ;;  %v474_v18 = vld [vmem:[%s1431_s30 + $0x10] sm:$0x1]  ;;  %v598_v19 = vld [vmem:[%s1772_s6 + $0x58] sm:$0xff]  ;;  %v596_v21 = vld [vmem:[%s1772_s6 + $0x48] sm:$0xff]  ;;  %s881_s16 = scalar_lea.hbm %s1750_s11, %s1755_s29  ;;  %s865_s18 = sshll.u32 %s1629_s28, 4  ;;  %s866_s18 = int_to_ptr.vmem [resolvable:$true] %s865_s18 }
  0x28   : > { %512 = vmatpush.msra.mxu0 %v485_v4  ;;  %v597_v20 = vld [vmem:[%s1772_s6 + $0x50] sm:$0xff]  ;;  %v595_v22 = vld [vmem:[%s1772_s6 + $0x40] sm:$0xff]  ;;  %v594_v24 = vld [vmem:[%s1772_s6 + $0x38] sm:$0xff]  ;;  %772 = vmatpush.msrb.mxu1 %v744_v45  ;;  %s884_s23 = sshll.u32 %s881_s16, 4  ;;  %s1665_s0 = scalar_lea.sflag [#allocation5], %s847_s26  ;;  %s885_s23 = int_to_ptr.hbm [resolvable:$true] %s884_s23 }
  0x29   : > { %579 = vmatpush.msra.mxu2 %v478_v6  ;;  %619 = vmatpush.msra.mxu3 %v599_v17  ;;  %v472_v23 = vld [vmem:[%s1431_s30] sm:$0xff]  ;;  %v593_v25 = vld [vmem:[%s1772_s6 + $0x30] sm:$0xff]  ;;  %v592_v26 = vld [vmem:[%s1772_s6 + $0x28] sm:$0xff]  ;;  %s1166_s2 = sshra.s32 %s885_s23, 4  ;;  %s1172_s15 = scalar_lea.hbm %s1750_s11, 32  ;;  %s1167_s2 = int_to_ptr.hbm [resolvable:$true] %s1166_s2 }
  0x2a   : > { %513 = vmatpush.msra.mxu0 %v484_v7  ;;  %1068 = vmatmul.msk.f32.vlgmr.msra.gmra.mxu2 %vm554_vm1, %v476_v8  ;;  %v591_v27 = vld [vmem:[%s1772_s6 + $0x20] sm:$0xff]  ;;  %v590_v28 = vld [vmem:[%s1772_s6 + $0x18] sm:$0xff]  ;;  %v589_v31 = vld [vmem:[%s1772_s6 + $0x10] sm:$0xff]  ;;  %p1173_p0 = scmp.lt.s32.totalorder %s1167_s2, %s1750_s11 }
  0x2b   : > { %1074 = vmatpush.msk.msrb.mxu2 %vm495_vm0, %v474_v18  ;;  %620 = vmatpush.msra.mxu3 %v597_v20  ;;  %v588_v32 = vld [vmem:[%s1772_s6 + $0x8] sm:$0xff]  ;;  %v587_v33 = vld [vmem:[%s1772_s6] sm:$0xff]  ;;  %v475_v35 = vld [vmem:[%s1431_s30 + $0x18] sm:$0x1] }
  0x2c   : > { %514 = vmatpush.msra.mxu0 %v483_v9  ;;  %v470_v34 = vld [vmem:[%s1773_s3] sm:$0xff]  ;;  %v471_v36 = vld [vmem:[%s1773_s3 + $0x8] sm:$0xff]  ;;  %v725_v50 = vld [vmem:[%s1747_s8 + $0x50] sm:$0xff]  ;;  %s1168_s3 = scalar_lea.hbm %s1167_s2, 16 }
  0x2d   : > { %1063 = vmatmul.msk.f32.vlgmr.msra.gmra.mxu0 %vm488_vm2, %v481_v10  ;;  %684 = vmatpush.msrb.mxu2 %v472_v23  ;;  %v473_v37 = vld [vmem:[%s1431_s30 + $0x8] sm:$0xff]  ;;  %v743_v49 = vld [vmem:[%s1747_s8 + $0xe0] sm:$0xff]  ;;  %v742_v51 = vld [vmem:[%s1747_s8 + $0xd8] sm:$0xff]  ;;  %s1094_s30 = sshll.u32 %s1366_s25, 5  ;;  %p1169_p11 = scmp.ne.s32.totalorder %s1167_s2, %s1168_s3 }
  0x2e   : > { %641 = vmatpush.msrb.mxu0 %v602_v14  ;;  %621 = vmatpush.msra.mxu3 %v595_v22  ;;  %v724_v52 = vld [vmem:[%s1747_s8 + $0x48] sm:$0xff]  ;;  %v741_v53 = vld [vmem:[%s1747_s8 + $0xd0] sm:$0xff]  ;;  %v723_v55 = vld [vmem:[%s1747_s8 + $0x40] sm:$0xff]  ;;  %p1174_p1 = scmp.lt.s32.totalorder %s1172_s15, %s1168_s3 }
  0x2f   : > { %773 = vmatpush.msrb.mxu1 %v743_v49  ;;  %v722_v58 = vld [vmem:[%s1747_s8 + $0x38] sm:$0xff]  ;;  %v721_v59 = vld [vmem:[%s1747_s8 + $0x30] sm:$0xff]  ;;  %v720_v60 = vld [vmem:[%s1747_s8 + $0x28] sm:$0xff]  ;;  %p1170_p12 = pnand %p1169_p11, %p1385_p5 }
  0x30   : > { %642 = vmatpush.msrb.mxu0 %v600_v16  ;;  %622 = vmatpush.msra.mxu3 %v593_v25  ;;  %v719_v61 = vld [vmem:[%s1747_s8 + $0x20] sm:$0xff]  ;;  %v740_v62 = vld [vmem:[%s1747_s8 + $0xc8] sm:$0xff]  ;;  %v718_v63 = vld [vmem:[%s1747_s8 + $0x18] sm:$0xff]  ;;  %p1175_p2 = por %p1174_p1, %p1173_p0 }
  0x31   : > { %774 = vmatpush.msrb.mxu1 %v742_v51  ;;  %v739_v0 = vld [vmem:[%s1747_s8 + $0xc0] sm:$0xff]  ;;  %v717_v1 = vld [vmem:[%s1747_s8 + $0x10] sm:$0xff]  ;;  %v738_v2 = vld [vmem:[%s1747_s8 + $0xb8] sm:$0xff]  ;;  %p1171_p13 = pneg %p1170_p12 }
  0x32   : > { %1069 = vmatmul.msk.f32.gmra.mxu2 %vm554_vm1, %v477_v13  ;;  %643 = vmatpush.msrb.mxu0 %v598_v19  ;;  %v716_v3 = vld [vmem:[%s1747_s8 + $0x8] sm:$0xff]  ;;  %v737_v4 = vld [vmem:[%s1747_s8 + $0xb0] sm:$0xff]  ;;  %v715_v5 = vld [vmem:[%s1747_s8] sm:$0xff] }
  0x33   : > { %623 = vmatpush.msra.mxu3 %v591_v27  ;;  %775 = vmatpush.msrb.mxu1 %v741_v53  ;;  %v736_v6 = vld [vmem:[%s1747_s8 + $0xa8] sm:$0xff]  ;;  %v735_v7 = vld [vmem:[%s1747_s8 + $0xa0] sm:$0xff]  ;;  %v734_v8 = vld [vmem:[%s1747_s8 + $0x98] sm:$0xff]  ;;  %p1176_p3 = pnand %p1175_p2, %p1171_p13 }
  0x34   : > { %644 = vmatpush.msrb.mxu0 %v596_v21  ;;  %v733_v9 = vld [vmem:[%s1747_s8 + $0x90] sm:$0xff]  ;;  %v732_v10 = vld [vmem:[%s1747_s8 + $0x88] sm:$0xff]  ;;  %v802_v12 = vld [vmem:[%s1748_s9 + $0x38] sm:$0xff] }
  0x35   : > { %1064 = vmatmul.msk.f32.gmra.mxu0 %vm488_vm2, %v482_v11  ;;  %624 = vmatpush.msra.mxu3 %v589_v31  ;;  %v731_v11 = vld [vmem:[%s1747_s8 + $0x80] sm:$0xff]  ;;  %v801_v13 = vld [vmem:[%s1748_s9 + $0x30] sm:$0xff]  ;;  %v800_v14 = vld [vmem:[%s1748_s9 + $0x28] sm:$0xff] }
  0x36   : > { %645 = vmatpush.msrb.mxu0 %v594_v24  ;;  %776 = vmatpush.msrb.mxu1 %v740_v62  ;;  %v799_v15 = vld [vmem:[%s1748_s9 + $0x20] sm:$0xff]  ;;  %v797_v31 = vld [vmem:[%s1748_s9 + $0x10] sm:$0xff] }
  0x37   : > { %625 = vmatpush.msra.mxu3 %v587_v33  ;;  %817 = vmatpush.msra.mxu2 %v802_v12  ;;  %v795_v33 = vld [vmem:[%s1748_s9] sm:$0xff] }
  0x38   : > { %646 = vmatpush.msrb.mxu0 %v592_v26  ;;  %777 = vmatpush.msrb.mxu1 %v739_v0 }
  0x39   : > { %747 = vmatpush.msrb.mxu3 %v730_v38  ;;  %818 = vmatpush.msra.mxu2 %v801_v13 }
  0x3a   : > { %647 = vmatpush.msrb.mxu0 %v590_v28  ;;  %1075 = vmatmul.msk.f32.vlgmr.msrb.gmra.mxu2 %vm656_vm4, %v470_v34  ;;  %v798_v28 = vld [vmem:[%s1748_s9 + $0x18] sm:$0xff] }
  0x3b   : > { %748 = vmatpush.msrb.mxu3 %v729_v39  ;;  %778 = vmatpush.msrb.mxu1 %v738_v2 }
  0x3c   : > { %648 = vmatpush.msrb.mxu0 %v588_v32  ;;  %819 = vmatpush.msra.mxu2 %v800_v14  ;;  %v796_v32 = vld [vmem:[%s1748_s9 + $0x8] sm:$0xff] }
  0x3d   : > { %749 = vmatpush.msrb.mxu3 %v728_v41  ;;  %779 = vmatpush.msrb.mxu1 %v737_v4 }
  0x3e   : > { %1077 = vmatpush.msk.msra.mxu0 %vm495_vm0, %v475_v35  ;;  %820 = vmatpush.msra.mxu2 %v799_v15 }
  0x3f   : > { %750 = vmatpush.msrb.mxu3 %v727_v44  ;;  %780 = vmatpush.msrb.mxu1 %v736_v6 }
  0x40   : > { %707 = vmatpush.msra.mxu0 %v473_v37  ;;  %821 = vmatpush.msra.mxu2 %v798_v28 }
  0x41   : > { %751 = vmatpush.msrb.mxu3 %v726_v48  ;;  %781 = vmatpush.msrb.mxu1 %v735_v7 }
  0x42   : > { %1076 = vmatmul.msk.f32.gmra.mxu2 %vm656_vm4, %v471_v36 }
  0x43   : > { %752 = vmatpush.msrb.mxu3 %v725_v50  ;;  %782 = vmatpush.msrb.mxu1 %v734_v8 }
  0x44   : > { %822 = vmatpush.msra.mxu2 %v797_v31 }
  0x45   : > { %753 = vmatpush.msrb.mxu3 %v724_v52  ;;  %783 = vmatpush.msrb.mxu1 %v733_v9 }
  0x46   : > { %823 = vmatpush.msra.mxu2 %v796_v32 }
  0x47   : > { %754 = vmatpush.msrb.mxu3 %v723_v55  ;;  %784 = vmatpush.msrb.mxu1 %v732_v10 }
  0x48   : > { %824 = vmatpush.msra.mxu2 %v795_v33 }
  0x49   : > { %755 = vmatpush.msrb.mxu3 %v722_v58  ;;  %785 = vmatpush.msrb.mxu1 %v731_v11 }
  0x4b   : > { %756 = vmatpush.msrb.mxu3 %v721_v59 }
  0x4d   : > { %757 = vmatpush.msrb.mxu3 %v720_v60 }
  0x4f   : > { %758 = vmatpush.msrb.mxu3 %v719_v61 }
  0x51   : > { %759 = vmatpush.msrb.mxu3 %v718_v63 }
  0x53   : > { %760 = vmatpush.msrb.mxu3 %v717_v1 }
  0x55   : > { %761 = vmatpush.msrb.mxu3 %v716_v3 }
  0x57   : > { %762 = vmatpush.msrb.mxu3 %v715_v5 }
  0xaa   : > { %v1475_v29 = vpop.f32.mrf.mxu0 }
  0xab   : > { %1065 = vmatmul.msk.f32.vlgmr.msra.gmra.mxu1 %vm524_vm3, %v1475_v29 }
  0xad   : > { %v581_v40 = vpop.f32.mrf.mxu2 }
  0xb2   : > { %v1479_v30 = vpop.f32.mrf.mxu0 }
  0xb3   : > { %1066 = vmatmul.msk.f32.gmra.mxu1 %vm524_vm3, %v1479_v30 }
  0xb5   : > { %v584_v54 = vpop.f32.mrf.mxu2 }
  0xbd   : > { %v686_v17 = vpop.f32.mrf.mxu2 }
  0xc5   : > { %v689_v21 = vpop.f32.mrf.mxu2 }
 0x128   : > { %v548_v46 = vpop.f32.mrf.mxu1 }
 0x129   : > { %v1524_v47 = vadd.f32 %v581_v40, %v548_v46 }
 0x12b   : > { %1070 = vmatmul.msk.f32.vlgmr.msra.gmra.mxu3 %vm603_vm5, %v1524_v47  ;;  %1072 = vmatmul.msk.f32.vlgmr.msrb.gmra.mxu0 %vm603_vm5, %v1524_v47 }
 0x130   : > { %v551_v56 = vpop.f32.mrf.mxu1 }
 0x131   : > { %v1551_v57 = vadd.f32 %v584_v54, %v551_v56 }
 0x133   : > { %1071 = vmatmul.msk.f32.gmra.mxu3 %vm603_vm5, %v1551_v57  ;;  %1073 = vmatmul.msk.f32.gmra.mxu0 %vm603_vm5, %v1551_v57 }
 0x13b   : > { %1078 = vmatmul.msk.f32.vlgmr.msra.gmra.mxu0 %vm656_vm4, %v470_v34 }
 0x143   : > { %1079 = vmatmul.msk.f32.gmra.mxu0 %vm656_vm4, %v471_v36 }
 0x1a8   : > { %v650_v16 = vpop.f32.mrf.mxu0 }
 0x1ae   : > { %v627_v18 = vpop.f32.mrf.mxu3 }
 0x1af   : > { %v687_v19 = vadd.f32 %v686_v17, %v627_v18 }
 0x1b0   : > { %v653_v20 = vpop.f32.mrf.mxu0 }
 0x1b1   : > { %834 = vst [vmem:[%s1629_s28] sm:$0xff] %v687_v19  ;;  %763 = vmatmul.f32.vlgmr.msrb.gmra.mxu3 %v687_v19 }
 0x1b6   : > { %v630_v22 = vpop.f32.mrf.mxu3 }
 0x1b7   : > { %v690_v23 = vadd.f32 %v689_v21, %v630_v22 }
 0x1b8   : > { %v709_v24 = vpop.f32.mrf.mxu0 }
 0x1b9   : > { %836 = vst [vmem:[%s1629_s28 + $0x10] sm:$0xff] %v690_v23  ;;  %v710_v25 = vadd.f32 %v709_v24, %v650_v16  ;;  %766 = vmatmul.f32.gmra.mxu3 %v690_v23 }
 0x1bb   : > { %835 = vst [vmem:[%s1629_s28 + $0x8] sm:$0xff] %v710_v25  ;;  %786 = vmatmul.f32.vlgmr.msrb.gmra.mxu1 %v710_v25 }
 0x1c0   : > { %v712_v26 = vpop.f32.mrf.mxu0 }
 0x1c1   : > { %v713_v27 = vadd.f32 %v712_v26, %v653_v20 }
 0x1c3   : > { %837 = vst [vmem:[%s1629_s28 + $0x18] sm:$0xff] %v713_v27  ;;  %789 = vmatmul.f32.gmra.mxu1 %v713_v27 }
 0x234   : > { %v764_v34 = vpop.f32.mrf.mxu3 }
 0x238   : > { %v787_v35 = vpop.f32.mrf.mxu1 }
 0x239   : > { %v788_v36 = vadd.f32 %v787_v35, %v764_v34 }
 0x23b   : > { %v793_v37 = vadd.f32 %v788_v36, %v1524_v47 }
 0x23c   : > { %v767_v38 = vpop.f32.mrf.mxu3 }
 0x23d   : > { %838 = vst.msk [vmem:[%s447_s20] sm:$0xff] %vm603_vm5, %v793_v37  ;;  %1080 = vmatmul.msk.f32.vlgmr.msra.gmra.mxu2 %vm603_vm5, %v793_v37 }
 0x240   : > { %v790_v39 = vpop.f32.mrf.mxu1 }
 0x241   : > { %v791_v40 = vadd.f32 %v790_v39, %v767_v38 }
 0x243   : > { %v794_v41 = vadd.f32 %v791_v40, %v1551_v57 }
 0x245   : > { %839 = vst.msk [vmem:[%s447_s20 + $0x8] sm:$0xff] %vm603_vm5, %v794_v41  ;;  %1081 = vmatmul.msk.f32.gmra.mxu2 %vm603_vm5, %v794_v41 }
 0x246   : > { %1179 = shalt.err (!%p1176_p3)
}
 0x247   : > { %s1276_s28 = smov 128   ;;  %s1277_s16 = smov 8  }
 0x248   : > { %1100 = dma.vmem_to_hbm [thread:$0]  (%p1385_p5), %s883_s17, 256, %s885_s23, %s1665_s0, %s1276_s28, %s1276_s28, %s1277_s16  }
 0x249   : > { %s864_s29 = scalar_lea.hbm %s1749_s10, %s1094_s30  ;;  %s843_s3 = scalar_lea.sflag [#allocation3], %s1626_s19 }
 0x24a   : > { %s867_s2 = sshll.u32 %s864_s29, 4  ;;  %s1200_s6 = scalar_lea.hbm %s1749_s10, 64  ;;  %s868_s2 = int_to_ptr.hbm [resolvable:$true] %s867_s2 }
 0x24b   : > { %s1194_s20 = sshra.s32 %s868_s2, 4  ;;  %s1195_s20 = int_to_ptr.hbm [resolvable:$true] %s1194_s20 }
 0x24c   : > { %s1196_s15 = scalar_lea.hbm %s1195_s20, 32  ;;  %p1201_p9 = scmp.lt.s32.totalorder %s1195_s20, %s1749_s10 }
 0x24d   : > { %p1197_p4 = scmp.ne.s32.totalorder %s1195_s20, %s1196_s15  ;;  %p1202_p10 = scmp.lt.s32.totalorder %s1200_s6, %s1196_s15 }
 0x24f   : > { %p1198_p7 = pnand %p1197_p4, %p1385_p5  ;;  %p1203_p11 = por %p1202_p10, %p1201_p9 }
 0x251   : > { %p1199_p8 = pneg %p1198_p7 }
 0x253   : > { %p1204_p12 = pnand %p1203_p11, %p1199_p8 }
 0x255   : > { %1207 = shalt.err (!%p1204_p12)
}
 0x256   : > { %s1278_s30 = smov 256   ;;  %s1279_s4 = smov 16  }
 0x257   : > { %1099 = dma.vmem_to_hbm [thread:$0]  (%p1385_p5), %s866_s18, 512, %s868_s2, %s843_s3, %s1278_s30, %s1278_s30, %s1279_s4  }
 0x258   : > { %s1774_s5 = sshll.u32 %s1626_s19, 4  ;;  %s1775_s29 = sshll.u32 %s1366_s25, 4 }
 0x259   : > { %s454_s26 = scalar_lea.vmem [#allocation6], %s1774_s5  ;;  %s898_s15 = scalar_lea.hbm %s1751_s12, %s1775_s29 }
 0x25a   : > { %s899_s1 = sshll.u32 %s454_s26, 4  ;;  %s901_s17 = sshll.u32 %s898_s15, 4  ;;  %s900_s1 = int_to_ptr.vmem [resolvable:$true] %s899_s1  ;;  %s902_s17 = int_to_ptr.hbm [resolvable:$true] %s901_s17 }
 0x25b   : > { %s1222_s18 = sshra.s32 %s902_s17, 4  ;;  %s1228_s3 = scalar_lea.hbm %s1751_s12, 32  ;;  %s1223_s18 = int_to_ptr.hbm [resolvable:$true] %s1222_s18 }
 0x25c   : > { %s1224_s19 = scalar_lea.hbm %s1223_s18, 16  ;;  %p1229_p2 = scmp.lt.s32.totalorder %s1223_s18, %s1751_s12 }
 0x25d   : > { %p1225_p13 = scmp.ne.s32.totalorder %s1223_s18, %s1224_s19  ;;  %p1230_p3 = scmp.lt.s32.totalorder %s1228_s3, %s1224_s19 }
 0x25f   : > { %p1226_p0 = pnand %p1225_p13, %p1385_p5  ;;  %p1231_p4 = por %p1230_p3, %p1229_p2 }
 0x261   : > { %p1227_p1 = pneg %p1226_p0 }
 0x263   : > { %p1232_p7 = pnand %p1231_p4, %p1227_p1 }
 0x2c0   : > { %v826_v42 = vpop.f32.mrf.mxu2 }
 0x2c1   : > { %v832_v43 = vadd.f32 %v826_v42, %v1475_v29 }
 0x2c3   : > { %840 = vst.msk [vmem:[%s454_s26] sm:$0xff] %vm524_vm3, %v832_v43 }
 0x2c8   : > { %v829_v44 = vpop.f32.mrf.mxu2 }
 0x2c9   : > { %v833_v45 = vadd.f32 %v829_v44, %v1479_v30 }
 0x2cb   : > { %841 = vst.msk [vmem:[%s454_s26 + $0x8] sm:$0xff] %vm524_vm3, %v833_v45 }
 0x2cc   : > { %1235 = shalt.err (!%p1232_p7)
}
 0x2cd   : > { %1101 = dma.vmem_to_hbm [thread:$0]  (%p1385_p5), %s900_s1, 256, %s902_s17, %s1665_s0, %s1276_s28, %s1276_s28, %s1277_s16  }
 0x2ce PF: > { %p1115_p8 = scmp.ge.s32.totalorder %s1274_s24, 2  ;;  %s916_s4 = sand.u32 1, %s1262_s21  }
 0x2cf   : > { %s917_s5 = scalar_lea.sflag [#allocation3], %s916_s4 }
 0x2d0   : > { %p1106_p9 = pnand %p1115_p8, %p1389_p6 }
 0x2d2   : > { %p1107_p10 = pneg %p1106_p9 }
 0x2d4   : > { %1253 = dma.done.wait (%p1107_p10), %s917_s5, 512  }
 0x2d5   : > { %1255 = vsyncadd (%p1107_p10), %s917_s5, 4294966784  ;;  %s1776_s26 = sadd.s32 4294967294, %s1274_s24  }
 0x2d6   : > { %s926_s13 = sand.u32 1, %s1776_s26  }
 0x2d7   : > { %s927_s29 = scalar_lea.sflag [#allocation5], %s926_s13 }
 0x2d8   : > { %1257 = dma.done.wait (%p1107_p10), %s927_s29, 512  }
 0x2d9   : > { %1259 = vsyncadd (%p1107_p10), %s927_s29, 4294966784  ;;  %s1777_s0 = sld [smem:[#allocation9_spill]]  ;;  %p26_p5 = scmp.ge.s32.totalorder %s1370_s27, 4  }
 0x2da   : > { %s1778_s23 = sld [smem:[#allocation10_spill]]  ;;  %s1779_s21 = smov %s1266_s22 }
 0x2db   : > { %s1781_s24 = smov %s1370_s27  ;;  %28 = sbr.rel (!%p26_p5) target bundleno = 13 (0xd), region = 133 }
 0x2df   : > { %s1780_s22 = smov %s1777_s0 }
 0x2e0   :  { %943 = vsyncpa [#allocation3], 1 }
 0x2e1   :  { %945 = vsyncpa [#allocation3 + $0x1], 1 }
 0x2e2   :  { %946 = vsyncpa [#allocation5], 1 }
 0x2e3   :  { %948 = vsyncpa [#allocation5 + $0x1], 1 }

</bundles_post_ra>
